<compile_context>
chip_gen: v5e
topology: v5e:2x2
jax: 0.10.0
libtpu: 0.0.40
codegen_flags: <defaults>
</compile_context>

<pallas_src>
import functools

import jax
import jax.numpy as jnp
from jax import lax
from jax.experimental import pallas as pl
from jax.experimental.pallas import tpu as pltpu


def _connection_kernel(x_ref, m_ref, w_ref, b_ref, o_ref, *, W):
    """Fused 3x3-conv + 1x1-conv + channel-concat, one image per grid step.

    x_ref : (1, Cin, HWp)   input image; channels on sublanes, pixels on lanes
    m_ref : (9, HWp)        per-tap f32 validity multipliers (resident)
    w_ref : (Cout, 9*Cin)   fused bf16 tap weights; cols [t*Cin,(t+1)*Cin) = tap t
                            (rows 0:Ch = 3x3 conv, rows Ch:2Ch = 1x1 conv, which
                             is nonzero only at the center tap t=4)
    b_ref : (Cout, 1)       fused f32 bias (b3 || b1)
    o_ref : (1, Cout, HWp)  output image, lane-dense over pixels
    """
    HWp = x_ref.shape[2]

    img = x_ref[0]                                   # (Cin, HWp), f32

    # Build the stacked (9*Cin, HWp) operand: shifting the flattened image by
    # dy*W + dx lanes and zeroing the wrapped positions is exactly the
    # zero-padded 3x3 neighborhood.
    parts = []
    for t in range(9):
        dy, dx = t // 3 - 1, t % 3 - 1
        if dy == 0 and dx == 0:
            parts.append(img)                        # center tap: no shift/mask
        else:
            shift = (-(dy * W + dx)) % HWp           # out[p] = in[p + dy*W + dx]
            shifted = pltpu.roll(img, shift=shift, axis=1)   # XLU lane rotate
            parts.append(shifted * m_ref[pl.ds(t, 1), :])    # (Cin,HWp)*(1,HWp)
    stacked = jnp.concatenate(parts, axis=0).astype(jnp.bfloat16)

    # Single wide MXU matmul with f32 accumulation: (Cout, 9*Cin) @ (9*Cin, HWp).
    acc = jnp.dot(w_ref[...], stacked, preferred_element_type=jnp.float32)
    o_ref[0] = (acc + b_ref[...]).astype(o_ref.dtype)


@jax.jit
def connection_forward(x_nchw, w3_torch, b3, w1_torch, b1):
    """Forward pass of `connection`.

    x_nchw   : (N, Cin, H, W)   float32
    w3_torch : (Ch, Cin, 3, 3)  PyTorch Conv2d weight layout
    b3       : (Ch,)
    w1_torch : (Ch, Cin, 1, 1)
    b1       : (Ch,)
    returns  : (N, 2*Ch, H, W)  float32 (NCHW, like the PyTorch module)
    """
    N, Cin, H, W = x_nchw.shape
    Ch = w3_torch.shape[0]
    Cout = 2 * Ch
    HW = H * W
    HWp = ((HW + 127) // 128) * 128                  # lane axis: multiple of 128

    # Fused weight (Cout, 9*Cin), bf16 for native-rate MXU.  Tap t = kh*3+kw
    # occupies columns [t*Cin, (t+1)*Cin).  Rows 0:Ch carry the 3x3 conv; rows
    # Ch:2Ch carry the 1x1 conv and are nonzero only at the center tap (t=4).
    w3_taps = jnp.transpose(w3_torch, (2, 3, 0, 1)).reshape(9, Ch, Cin)
    w1_2d = w1_torch[:, :, 0, 0]                                     # (Ch, Cin)
    lower = jnp.zeros((9, Ch, Cin), dtype=w1_2d.dtype).at[4].set(w1_2d)
    w_all = jnp.concatenate([w3_taps, lower], axis=1)                # (9, Cout, Cin)
    w_flat = (jnp.transpose(w_all, (1, 0, 2))
              .reshape(Cout, 9 * Cin).astype(jnp.bfloat16))          # (Cout, 9*Cin)
    b_all = jnp.concatenate([b3, b1]).reshape(Cout, 1).astype(jnp.float32)

    # Per-tap validity multipliers, computed once (hoisted out of the kernel).
    flat = jnp.arange(HWp)
    xi, yi = flat % W, flat // W
    rows = []
    for t in range(9):
        dy, dx = t // 3 - 1, t % 3 - 1
        rows.append((yi + dy >= 0) & (yi + dy < H)
                    & (xi + dx >= 0) & (xi + dx < W) & (flat < HW))
    masks = jnp.stack(rows, axis=0).astype(jnp.float32)              # (9, HWp)

    # Free contiguous-dim merge; zero-pad the lane axis only when needed.
    x_flat = x_nchw.reshape(N, Cin, HW)
    if HWp != HW:
        x_flat = jnp.pad(x_flat, ((0, 0), (0, 0), (0, HWp - HW)))

    # VMEM budget: double-buffered per-image I/O blocks + resident constants +
    # in-kernel working set, clamped to [32 MiB, 64 MiB] (64 MiB = smallest
    # physical VMEM across v5e/v6e/v7x; toy sizes stay at the 32 MiB floor).
    blk_bytes = (Cin + Cout) * HWp * 4
    resident = Cout * 9 * Cin * 2 + Cout * 4 + 9 * HWp * 4
    work = 9 * Cin * HWp * 6 + Cout * HWp * 4
    needed = 2 * blk_bytes + resident + work
    vmem_limit = int(min(max(2 * needed, 32 * 1024 * 1024), 64 * 1024 * 1024))

    kernel = functools.partial(_connection_kernel, W=W)
    out_flat = pl.pallas_call(
        kernel,
        out_shape=jax.ShapeDtypeStruct((N, Cout, HWp), x_nchw.dtype),
        grid=(N,),
        in_specs=[
            pl.BlockSpec((1, Cin, HWp), lambda i: (i, 0, 0)),
            pl.BlockSpec((9, HWp), lambda i: (0, 0)),          # resident masks
            pl.BlockSpec((Cout, 9 * Cin), lambda i: (0, 0)),   # resident weights
            pl.BlockSpec((Cout, 1), lambda i: (0, 0)),         # resident bias
        ],
        out_specs=pl.BlockSpec((1, Cout, HWp), lambda i: (i, 0, 0)),
        compiler_params=pltpu.CompilerParams(
            dimension_semantics=("parallel",),
            vmem_limit_bytes=vmem_limit),
    )(x_flat, masks, w_flat, b_all)

    if HWp != HW:
        out_flat = out_flat[:, :, :HW]
    return out_flat.reshape(N, Cout, H, W)


def _reference_forward(x_nchw, w3_torch, b3, w1_torch, b1):
    """Pure-JAX reference (lax conv) for correctness checking."""
    dn = lax.conv_dimension_numbers(x_nchw.shape, w3_torch.shape,
                                    ("NCHW", "OIHW", "NCHW"))
    x1 = lax.conv_general_dilated(x_nchw, w3_torch, (1, 1), ((1, 1), (1, 1)),
                                  dimension_numbers=dn) + b3[None, :, None, None]
    x2 = lax.conv_general_dilated(x_nchw, w1_torch, (1, 1), ((0, 0), (0, 0)),
                                  dimension_numbers=dn) + b1[None, :, None, None]
    return jnp.concatenate([x1, x2], axis=1)


def _run_case(key, N, in_ch, ou_ch, H, W):
    Ch = ou_ch // 2
    kx, kw3, kb3, kw1, kb1 = jax.random.split(key, 5)
    x = jax.random.normal(kx, (N, in_ch, H, W), dtype=jnp.float32)
    # Deterministic parameter init (synthetic; no checkpoint load).
    w3 = 0.1 * jax.random.normal(kw3, (Ch, in_ch, 3, 3), dtype=jnp.float32)
    b3 = 0.1 * jax.random.normal(kb3, (Ch,), dtype=jnp.float32)
    w1 = 0.1 * jax.random.normal(kw1, (Ch, in_ch, 1, 1), dtype=jnp.float32)
    b1 = 0.1 * jax.random.normal(kb1, (Ch,), dtype=jnp.float32)

    out = jax.block_until_ready(connection_forward(x, w3, b3, w1, b1))
    ref = jax.block_until_ready(_reference_forward(x, w3, b3, w1, b1))

    assert out.shape == (N, ou_ch, H, W), out.shape
    # bf16 MXU operands with f32 accumulation -> relaxed tolerance vs f32 ref.
    assert jnp.allclose(out, ref, atol=3e-2, rtol=3e-2), "mismatch vs reference"


if __name__ == "__main__":
    key = jax.random.PRNGKey(0)
    k0, k1 = jax.random.split(key)
    # Primary small case consistent with the module: in_ch=4, ou_ch=8.
    _run_case(k0, N=2, in_ch=4, ou_ch=8, H=16, W=16)
    # H != W, odd N, and H*W not a multiple of 128 (exercises lane padding).
    _run_case(k1, N=3, in_ch=4, ou_ch=8, H=14, W=10)
    print("KERNEL_OK")
</pallas_src>

<mosaic_0001>
module attributes {stable_mosaic.version = 11 : i64} {
  func.func @_connection_kernel(%arg0: i32, %arg1: memref<1x4x256xf32, #tpu.memory_space<vmem>>, %arg2: memref<9x256xf32, #tpu.memory_space<vmem>>, %arg3: memref<8x36xbf16, #tpu.memory_space<vmem>>, %arg4: memref<8x1xf32, #tpu.memory_space<vmem>>, %arg5: memref<1x8x256xf32, #tpu.memory_space<vmem>>) attributes {dimension_semantics = [#tpu.dimension_semantics<parallel>], iteration_bounds = array<i64: 2>, scalar_prefetch = 0 : i64, scratch_operands = 0 : i64, tpu.core_type = #tpu.core_type<tc>, window_params = [{transform_indices = @transform_0, window_bounds = array<i64: 1, 4, 256>}, {pipeline_mode = #tpu.pipeline_mode<synchronous>, transform_indices = @transform_1, window_bounds = array<i64: 9, 256>}, {pipeline_mode = #tpu.pipeline_mode<synchronous>, transform_indices = @transform_2, window_bounds = array<i64: 8, 36>}, {pipeline_mode = #tpu.pipeline_mode<synchronous>, transform_indices = @transform_3, window_bounds = array<i64: 8, 1>}, {transform_indices = @transform_4, window_bounds = array<i64: 1, 8, 256>}]} {
    %c0 = arith.constant 0 : index
    %c0_0 = arith.constant 0 : index
    %c0_1 = arith.constant 0 : index
    %0 = vector.load %arg1[%c0, %c0_0, %c0_1] : memref<1x4x256xf32, #tpu.memory_space<vmem>>, vector<1x4x256xf32>
    %1 = vector.shape_cast %0 : vector<1x4x256xf32> to vector<4x256xf32>
    %c17_i32 = arith.constant 17 : i32
    %2 = tpu.dynamic_rotate %1 by %c17_i32 dim 1 : vector<4x256xf32>, i32 -> vector<4x256xf32>
    %c0_2 = arith.constant 0 : index
    %c0_3 = arith.constant 0 : index
    %3 = vector.load %arg2[%c0_2, %c0_3] : memref<9x256xf32, #tpu.memory_space<vmem>>, vector<1x256xf32>
    %4 = vector.broadcast %3 : vector<1x256xf32> to vector<4x256xf32>
    %5 = arith.mulf %2, %4 : vector<4x256xf32>
    %c16_i32 = arith.constant 16 : i32
    %6 = tpu.dynamic_rotate %1 by %c16_i32 dim 1 : vector<4x256xf32>, i32 -> vector<4x256xf32>
    %c1 = arith.constant 1 : index
    %c0_4 = arith.constant 0 : index
    %7 = vector.load %arg2[%c1, %c0_4] : memref<9x256xf32, #tpu.memory_space<vmem>>, vector<1x256xf32>
    %8 = vector.broadcast %7 : vector<1x256xf32> to vector<4x256xf32>
    %9 = arith.mulf %6, %8 : vector<4x256xf32>
    %c15_i32 = arith.constant 15 : i32
    %10 = tpu.dynamic_rotate %1 by %c15_i32 dim 1 : vector<4x256xf32>, i32 -> vector<4x256xf32>
    %c2 = arith.constant 2 : index
    %c0_5 = arith.constant 0 : index
    %11 = vector.load %arg2[%c2, %c0_5] : memref<9x256xf32, #tpu.memory_space<vmem>>, vector<1x256xf32>
    %12 = vector.broadcast %11 : vector<1x256xf32> to vector<4x256xf32>
    %13 = arith.mulf %10, %12 : vector<4x256xf32>
    %c1_i32 = arith.constant 1 : i32
    %14 = tpu.dynamic_rotate %1 by %c1_i32 dim 1 : vector<4x256xf32>, i32 -> vector<4x256xf32>
    %c3 = arith.constant 3 : index
    %c0_6 = arith.constant 0 : index
    %15 = vector.load %arg2[%c3, %c0_6] : memref<9x256xf32, #tpu.memory_space<vmem>>, vector<1x256xf32>
    %16 = vector.broadcast %15 : vector<1x256xf32> to vector<4x256xf32>
    %17 = arith.mulf %14, %16 : vector<4x256xf32>
    %c255_i32 = arith.constant 255 : i32
    %18 = tpu.dynamic_rotate %1 by %c255_i32 dim 1 : vector<4x256xf32>, i32 -> vector<4x256xf32>
    %c5 = arith.constant 5 : index
    %c0_7 = arith.constant 0 : index
    %19 = vector.load %arg2[%c5, %c0_7] : memref<9x256xf32, #tpu.memory_space<vmem>>, vector<1x256xf32>
    %20 = vector.broadcast %19 : vector<1x256xf32> to vector<4x256xf32>
    %21 = arith.mulf %18, %20 : vector<4x256xf32>
    %c241_i32 = arith.constant 241 : i32
    %22 = tpu.dynamic_rotate %1 by %c241_i32 dim 1 : vector<4x256xf32>, i32 -> vector<4x256xf32>
    %c6 = arith.constant 6 : index
    %c0_8 = arith.constant 0 : index
    %23 = vector.load %arg2[%c6, %c0_8] : memref<9x256xf32, #tpu.memory_space<vmem>>, vector<1x256xf32>
    %24 = vector.broadcast %23 : vector<1x256xf32> to vector<4x256xf32>
    %25 = arith.mulf %22, %24 : vector<4x256xf32>
    %c240_i32 = arith.constant 240 : i32
    %26 = tpu.dynamic_rotate %1 by %c240_i32 dim 1 : vector<4x256xf32>, i32 -> vector<4x256xf32>
    %c7 = arith.constant 7 : index
    %c0_9 = arith.constant 0 : index
    %27 = vector.load %arg2[%c7, %c0_9] : memref<9x256xf32, #tpu.memory_space<vmem>>, vector<1x256xf32>
    %28 = vector.broadcast %27 : vector<1x256xf32> to vector<4x256xf32>
    %29 = arith.mulf %26, %28 : vector<4x256xf32>
    %c239_i32 = arith.constant 239 : i32
    %30 = tpu.dynamic_rotate %1 by %c239_i32 dim 1 : vector<4x256xf32>, i32 -> vector<4x256xf32>
    %c8 = arith.constant 8 : index
    %c0_10 = arith.constant 0 : index
    %31 = vector.load %arg2[%c8, %c0_10] : memref<9x256xf32, #tpu.memory_space<vmem>>, vector<1x256xf32>
    %32 = vector.broadcast %31 : vector<1x256xf32> to vector<4x256xf32>
    %33 = arith.mulf %30, %32 : vector<4x256xf32>
    %34 = tpu.concatenate %5, %9, %13, %17, %1, %21, %25, %29, %33 in 0 : vector<4x256xf32>, vector<4x256xf32>, vector<4x256xf32>, vector<4x256xf32>, vector<4x256xf32>, vector<4x256xf32>, vector<4x256xf32>, vector<4x256xf32>, vector<4x256xf32> -> vector<36x256xf32>
    %35 = arith.truncf %34 : vector<36x256xf32> to vector<36x256xbf16>
    %c0_11 = arith.constant 0 : index
    %c0_12 = arith.constant 0 : index
    %36 = vector.load %arg3[%c0_11, %c0_12] : memref<8x36xbf16, #tpu.memory_space<vmem>>, vector<8x36xbf16>
    %cst = arith.constant dense<0.000000e+00> : vector<8x256xf32>
    %37 = tpu.matmul %36, %35, %cst {dimension_numbers = #tpu.dot_dimension_numbers<[1], [0], [0], [1], [0, 0, 1, 1], [], []>} : vector<8x36xbf16>, vector<36x256xbf16>, vector<8x256xf32> -> vector<8x256xf32>
    %c0_13 = arith.constant 0 : index
    %c0_14 = arith.constant 0 : index
    %38 = vector.load %arg4[%c0_13, %c0_14] : memref<8x1xf32, #tpu.memory_space<vmem>>, vector<8x1xf32>
    %39 = vector.broadcast %38 : vector<8x1xf32> to vector<8x256xf32>
    %40 = arith.addf %37, %39 : vector<8x256xf32>
    %c0_15 = arith.constant 0 : index
    %c0_16 = arith.constant 0 : index
    %c0_17 = arith.constant 0 : index
    %41 = vector.load %arg5[%c0_15, %c0_16, %c0_17] : memref<1x8x256xf32, #tpu.memory_space<vmem>>, vector<1x8x256xf32>
    %42 = vector.shape_cast %41 : vector<1x8x256xf32> to vector<8x256xf32>
    %43 = vector.shape_cast %40 : vector<8x256xf32> to vector<1x8x256xf32>
    tpu.vector_store %arg5[%c0_15, %c0_16, %c0_17], %43 {strides = array<i32>} : memref<1x8x256xf32, #tpu.memory_space<vmem>>, vector<1x8x256xf32>,
    return
  }
  func.func @transform_0(%arg0: i32) -> (i32, i32, i32) {
    %c0_i32 = arith.constant 0 : i32
    %c0_i32_0 = arith.constant 0 : i32
    %c0_i32_1 = arith.constant 0 : i32
    return %arg0, %c0_i32, %c0_i32_0 : i32, i32, i32
  }
  func.func @transform_1(%arg0: i32) -> (i32, i32) {
    %c0_i32 = arith.constant 0 : i32
    %c0_i32_0 = arith.constant 0 : i32
    %c0_i32_1 = arith.constant 0 : i32
    return %c0_i32, %c0_i32_0 : i32, i32
  }
  func.func @transform_2(%arg0: i32) -> (i32, i32) {
    %c0_i32 = arith.constant 0 : i32
    %c0_i32_0 = arith.constant 0 : i32
    %c0_i32_1 = arith.constant 0 : i32
    return %c0_i32, %c0_i32_0 : i32, i32
  }
  func.func @transform_3(%arg0: i32) -> (i32, i32) {
    %c0_i32 = arith.constant 0 : i32
    %c0_i32_0 = arith.constant 0 : i32
    %c0_i32_1 = arith.constant 0 : i32
    return %c0_i32, %c0_i32_0 : i32, i32
  }
  func.func @transform_4(%arg0: i32) -> (i32, i32, i32) {
    %c0_i32 = arith.constant 0 : i32
    %c0_i32_0 = arith.constant 0 : i32
    %c0_i32_1 = arith.constant 0 : i32
    return %arg0, %c0_i32, %c0_i32_0 : i32, i32, i32
  }
}

</mosaic_0001>

<bundles_post_ra>
// kernel: connection_forward.1
= control target key start
LH: loop header
LB: loop body
LE: loop exit
PB: predicated region body
PF: predicated region fallthrough
CT: control target
= control target key end

     0   :  { %s598_s15 = smov 0   ;;  %s699_s0 = inlined_call_operand.vmem [shape: f32[2,4,256], index: 0, kind: input, shape index: {}]   ;;  %s700_s1 = inlined_call_operand.vmem [shape: f32[9,256], index: 1, kind: input, shape index: {}]   ;;  %s701_s2 = inlined_call_operand.vmem [shape: bf16[8,36], index: 2, kind: input, shape index: {}]   ;;  %s702_s3 = inlined_call_operand.vmem [shape: f32[8,1], index: 3, kind: input, shape index: {}]   ;;  %s703_s4 = inlined_call_operand.vmem [shape: f32[2,8,256], index: 4, kind: output, shape index: {}]  }
   0x1 LB: > { %s515_s16 = sadd.s32 4294967295, %s562_s15   ;;  %p519_p0 = scmp.ge.s32.totalorder %s562_s15, 1  ;;  %s562_s15 = sphi %s598_s15, %s14_s15  }
   0x2   : > { %p162_p1 = scmp.lt.s32.totalorder %s562_s15, 3 }
   0x4   : > { %p163_p2 = pnand %p519_p0, %p162_p1 }
   0x5   : > { %p188_p3 = scmp.lt.s32.totalorder (!%p163_p2), %s515_s16, 1  ;;  %s564_s21 = smov (!%p163_p2), 17  }
   0x6   : > { %166 = sbr.rel (%p163_p2) target bundleno = 353 (0x161), region = 36  ;;  %s565_s22 = smov (!%p163_p2), 16  }
   0x7   : > { %s566_s23 = smov (!%p163_p2), 1   ;;  %s567_s24 = smov (!%p163_p2), 127  }
   0x8   : > { %s568_s25 = smov (!%p163_p2), 113   ;;  %s569_s26 = smov (!%p163_p2), 112  }
   0x9   : > { %s570_s27 = smov (!%p163_p2), 111   ;;  %s571_s28 = smov (!%p163_p2), 15  }
   0xb   : > { %s705_s16 = smov (!%p188_p3, %s515_s16), 1  ;;  %v210_v24 = vlaneseq  ;;  %v415_v28 = vld [vmem:[%s702_s3] sm:$0xff]  ;;  %v572_v29 = vmov 0   ;;  %v530_v55 = vld [vmem:[%s700_s1 + $0x10] ss:$8 sm:$0x3] }
   0xc   : > { %s535_s17 = sshll.u32 %s705_s16, 3  ;;  %554 = vset.pattern.permute.xlu1 %v572_v29  ;;  %555 = vset.pattern.permute.xlu0 %v572_v29  ;;  %v626_v30 = vld [vmem:[%s700_s1 + $0x3] ss:$8 sm:$0x3]  ;;  %v364_v63 = vperm.slane %v530_v55, 0  ;;  %vm399_vm7 = vcmask 1043456  }
   0xd   : > { %s192_s20 = scalar_lea.vmem %s699_s0, %s535_s17  ;;  %v618_v27 = vand.u32 127, %v210_v24  ;;  %v524_v31 = vld [vmem:[%s700_s1 + $0x1] ss:$8 sm:$0x3]  ;;  %v280_v35 = vperm.slane %v626_v30, 0  ;;  %v281_v49 = vperm.slane %v626_v30, 1 }
   0xe   : > { %v199_v0 = vld [vmem:[%s192_s20] sm:$0xff]  ;;  %v238_v36 = vperm.slane %v524_v31, 0  ;;  %v239_v37 = vperm.slane %v524_v31, 1  ;;  %vm425_vm8 = vcmask 1041408   ;;  %vm421_vm10 = vcmask 293888  }
   0xf   : > { %201 = vst [vmem:[#allocation1] ss:$2 sm:$0xff] %v199_v0  ;;  %vm232_vm0 = vcmp.lt.s32.totalorder %v618_v27, 16  ;;  %v529_v32 = vld [vmem:[%s700_s1 + $0x7] ss:$8 sm:$0x3] }
  0x10   : > { %v527_v33 = vld [vmem:[%s700_s1 + $0x5] ss:$8 sm:$0x3]  ;;  %vm337_vm1 = vcmp.lt.s32.totalorder %v618_v27, 112  ;;  %vm295_vm2 = vcmp.lt.s32.totalorder %v618_v27, 127  ;;  %v343_v40 = vperm.slane %v529_v32, 0 }
  0x11   : > { %v344_v41 = vperm.slane %v529_v32, 1  ;;  %v301_v44 = vperm.slane %v527_v33, 0  ;;  %v302_v45 = vperm.slane %v527_v33, 1  ;;  %v528_v48 = vld [vmem:[%s700_s1 + $0x6] ss:$8 sm:$0x3] }
  0x12   : > { %vm274_vm3 = vcmp.lt.s32.totalorder %v618_v27, 1  ;;  %v215_v54 = vld [vmem:[%s700_s1] ss:$8 sm:$0x3]  ;;  %vm316_vm4 = vcmp.lt.s32.totalorder %v618_v27, 113  ;;  %v322_v58 = vperm.slane %v528_v48, 0 }
  0x13   : > { %v323_v61 = vperm.slane %v528_v48, 1  ;;  %vm212_vm5 = vcmp.lt.s32.totalorder %v618_v27, 17  ;;  %v217_v62 = vperm.slane %v215_v54, 0  ;;  %vm358_vm6 = vcmp.lt.s32.totalorder %v618_v27, 111 }
  0x14   : > { %vm253_vm9 = vcmp.lt.s32.totalorder %v618_v27, 15 }
  0x16   : > { %v202_v1 = vld.sshfl [vmem:[#allocation1] sm:$0xff pattern:$0x75316420]  ;;  %v203_v2 = vld.sshfl [vmem:[#allocation1 + $0x8] sm:$0xff pattern:$0x75316420] }
  0x17   : > { %223 = vst [vmem:[#allocation1] ss:$2 sm:$0xff] %v199_v0  ;;  %206 = vrot.lane.b32.xlu0 %v202_v1, %s564_s21 }
  0x1e   : > { %v224_v3 = vld.sshfl [vmem:[#allocation1] sm:$0xff pattern:$0x75316420]  ;;  %v225_v4 = vld.sshfl [vmem:[#allocation1 + $0x8] sm:$0xff pattern:$0x75316420] }
  0x1f   : > { %244 = vst [vmem:[#allocation1] ss:$2 sm:$0xff] %v199_v0  ;;  %230 = vrot.lane.b32.xlu0 %v225_v4, %s565_s22  ;;  %228 = vrot.lane.b32.xlu2 %v224_v3, %s565_s22  ;;  %v218_v3 = vperm.slane %v215_v54, 1 }
  0x26   : > { %v245_v5 = vld.sshfl [vmem:[#allocation1] sm:$0xff pattern:$0x75316420]  ;;  %v246_v6 = vld.sshfl [vmem:[#allocation1 + $0x8] sm:$0xff pattern:$0x75316420] }
  0x27   : > { %265 = vst [vmem:[#allocation1] ss:$2 sm:$0xff] %v199_v0 }
  0x2e   : > { %v266_v7 = vld.sshfl [vmem:[#allocation1] sm:$0xff pattern:$0x75316420]  ;;  %v267_v8 = vld.sshfl [vmem:[#allocation1 + $0x8] sm:$0xff pattern:$0x75316420] }
  0x2f   : > { %270 = vrot.lane.b32.xlu1 %v266_v7, %s566_s23  ;;  %286 = vst [vmem:[#allocation1] ss:$2 sm:$0xff] %v199_v0  ;;  %272 = vrot.lane.b32.xlu2 %v267_v8, %s566_s23 }
  0x36   : > { %v287_v9 = vld.sshfl [vmem:[#allocation1] sm:$0xff pattern:$0x75316420]  ;;  %v288_v10 = vld.sshfl [vmem:[#allocation1 + $0x8] sm:$0xff pattern:$0x75316420] }
  0x37   : > { %291 = vrot.lane.b32.xlu1 %v287_v9, %s567_s24  ;;  %307 = vst [vmem:[#allocation1] ss:$2 sm:$0xff] %v199_v0 }
  0x3e   : > { %v309_v11 = vld.sshfl [vmem:[#allocation1 + $0x8] sm:$0xff pattern:$0x75316420]  ;;  %v308_v12 = vld.sshfl [vmem:[#allocation1] sm:$0xff pattern:$0x75316420] }
  0x3f   : > { %293 = vrot.lane.b32.xlu1 %v288_v10, %s567_s24  ;;  %312 = vrot.lane.b32.xlu0 %v308_v12, %s568_s25  ;;  %328 = vst [vmem:[#allocation1] ss:$2 sm:$0xff] %v199_v0 }
  0x46   : > { %v329_v13 = vld.sshfl [vmem:[#allocation1] sm:$0xff pattern:$0x75316420]  ;;  %v330_v14 = vld.sshfl [vmem:[#allocation1 + $0x8] sm:$0xff pattern:$0x75316420] }
  0x47   : > { %314 = vrot.lane.b32.xlu1 %v309_v11, %s568_s25  ;;  %349 = vst [vmem:[#allocation1] ss:$2 sm:$0xff] %v199_v0  ;;  %333 = vrot.lane.b32.xlu2 %v329_v13, %s569_s26  ;;  %v525_v13 = vld [vmem:[%s700_s1 + $0x2] ss:$8 sm:$0x3]  ;;  %s536_s25 = sshll.u32 %s705_s16, 4 }
  0x4e   : > { %v350_v15 = vld.sshfl [vmem:[#allocation1] sm:$0xff pattern:$0x75316420]  ;;  %v351_v16 = vld.sshfl [vmem:[#allocation1 + $0x8] sm:$0xff pattern:$0x75316420] }
  0x4f   : > { %208 = vrot.lane.b32.xlu1 %v203_v2, %s564_s21  ;;  %354 = vrot.lane.b32.xlu0 %v350_v15, %s570_s27  ;;  %382 = vst [vmem:[#allocation1] ss:$2 sm:$0xff] %v199_v0  ;;  %v365_v0 = vperm.slane %v530_v55, 1  ;;  %v414_v55 = vld [vmem:[%s701_s2] sm:$0xf] }
  0x50   : > { %335 = vrot.lane.b32.xlu2 %v330_v14, %s569_s26 }
  0x57   : > { %356 = vrot.lane.b32.xlu0 %v351_v16, %s570_s27  ;;  %418 = vperm.xlu1 %554, %v415_v28   ;;  %v260_v28 = vperm.slane %v525_v13, 1 }
  0x58   : > { %249 = vrot.lane.b32.xlu2 %v245_v5, %s571_s28 }
  0x5f   : > { %251 = vrot.lane.b32.xlu0 %v246_v6, %s571_s28  ;;  %s197_s28 = scalar_lea.vmem %s703_s4, %s536_s25 }
  0x79   : > { %v229_v17 = vpop.permute.xlu2 %228 }
  0x89   : > { %v616_v19 = vpop.permute.xlu0 %206  ;;  %v273_v20 = vpop.permute.xlu2 %272 }
  0x91   : > { %v231_v22 = vpop.permute.xlu0 %230 }
  0x92   : > { %v233_v38 = vsel %vm232_vm0, %v229_v17, %v231_v22  ;;  %v234_v39 = vsel %vm232_vm0, %v231_v22, %v229_v17  ;;  %v383_v22 = vld.sshfl [vmem:[#allocation1] sm:$0xff pattern:$0x75316420] }
  0x93   : > { %v646_v52 = vmul.f32 %v238_v36, %v234_v39  ;;  %v648_v53 = vmul.f32 %v239_v37, %v233_v38 }
  0x95   : > { %v372_v38 = vrot.slane %v646_v52, 4  ;;  %v373_v39 = vrot.slane %v648_v53, 4 }
  0xa1   : > { %v614_v18 = vpop.permute.xlu1 %270  ;;  %v334_v23 = vpop.permute.xlu2 %333 }
  0xa2   : > { %v275_v4 = vsel %vm274_vm3, %v614_v18, %v273_v20  ;;  %v276_v5 = vsel %vm274_vm3, %v273_v20, %v614_v18 }
  0xa3   : > { %v284_v24 = vmul.f32 %v280_v35, %v276_v5  ;;  %v285_v18 = vmul.f32 %v281_v49, %v275_v4 }
  0xa9   : > { %v292_v21 = vpop.permute.xlu1 %291 }
  0xaa   : > { %v336_v34 = vpop.permute.xlu2 %335 }
  0xab   : > { %v338_v46 = vsel %vm337_vm1, %v334_v23, %v336_v34  ;;  %v339_v47 = vsel %vm337_vm1, %v336_v34, %v334_v23  ;;  %v384_v23 = vld.sshfl [vmem:[#allocation1 + $0x8] sm:$0xff pattern:$0x75316420] }
  0xac   : > { %v347_v56 = vmul.f32 %v343_v40, %v338_v46  ;;  %v348_v57 = vmul.f32 %v344_v41, %v339_v47  ;;  %v378_v46 = vrot.slane %v284_v24, 4  ;;  %v379_v47 = vrot.slane %v285_v18, 4 }
  0xae   : > { %v395_v6 = vrot.slane %v347_v56, 4  ;;  %v396_v7 = vrot.slane %v348_v57, 4 }
  0xb1   : > { %v294_v25 = vpop.permute.xlu1 %293  ;;  %v313_v26 = vpop.permute.xlu0 %312 }
  0xb2   : > { %v296_v50 = vsel %vm295_vm2, %v292_v21, %v294_v25  ;;  %v297_v51 = vsel %vm295_vm2, %v294_v25, %v292_v21  ;;  %v250_v35 = vpop.permute.xlu2 %249 }
  0xb3   : > { %v305_v59 = vmul.f32 %v301_v44, %v296_v50  ;;  %v306_v60 = vmul.f32 %v302_v45, %v297_v51 }
  0xb5   : > { %v389_v9 = vrot.slane %v305_v59, 4  ;;  %v390_v10 = vrot.slane %v306_v60, 4 }
  0xb7   : > { %v404_v31 = vsel %vm399_vm7, %v383_v22, %v389_v9  ;;  %v405_v32 = vsel %vm399_vm7, %v384_v23, %v390_v10 }
  0xb9   : > { %v315_v42 = vpop.permute.xlu1 %314 }
  0xba   : > { %v317_v1 = vsel %vm316_vm4, %v313_v26, %v315_v42  ;;  %v318_v2 = vsel %vm316_vm4, %v315_v42, %v313_v26  ;;  %v259_v26 = vperm.slane %v525_v13, 0 }
  0xbb   : > { %v326_v14 = vmul.f32 %v322_v58, %v317_v1  ;;  %v327_v15 = vmul.f32 %v323_v61, %v318_v2 }
  0xbd   : > { %v406_v36 = vsel %vm399_vm7, %v326_v14, %v395_v6  ;;  %v407_v37 = vsel %vm399_vm7, %v327_v15, %v396_v7 }
  0xbe   : > { %v410_v44 = vpack.c.bf16 %v406_v36, %v404_v31  ;;  %v411_v45 = vpack.c.bf16 %v407_v37, %v405_v32 }
  0xc1   : > { %v355_v43 = vpop.permute.xlu0 %354  ;;  %v209_v16 = vpop.permute.xlu1 %208 }
  0xc2   : > { %v213_v29 = vsel %vm212_vm5, %v616_v19, %v209_v16  ;;  %v214_v30 = vsel %vm212_vm5, %v209_v16, %v616_v19 }
  0xc3   : > { %v221_v40 = vmul.f32 %v217_v62, %v214_v30  ;;  %v222_v41 = vmul.f32 %v218_v3, %v213_v29 }
  0xc5   : > { %v400_v50 = vsel %vm399_vm7, %v221_v40, %v372_v38  ;;  %v401_v52 = vsel %vm399_vm7, %v222_v41, %v373_v39 }
  0xc9   : > { %v357_v8 = vpop.permute.xlu0 %356  ;;  %v419_v56 = vpop.permute.xlu1 %418 }
  0xca   : > { %v359_v11 = vsel %vm358_vm6, %v355_v43, %v357_v8  ;;  %v360_v12 = vsel %vm358_vm6, %v357_v8, %v355_v43 }
  0xcb   : > { %v368_v17 = vmul.f32 %v364_v63, %v359_v11  ;;  %v369_v21 = vmul.f32 %v365_v0, %v360_v12 }
  0xcd   : > { %v412_v20 = vpack.c.bf16 %v368_v17, %v368_v17  ;;  %v413_v25 = vpack.c.bf16 %v369_v21, %v369_v21 }
  0xcf   : > { %v427_v33 = vsel %vm425_vm8, %v412_v20, 0  ;;  %v430_v34 = vsel %vm425_vm8, %v413_v25, 0 }
  0xd0   : > { %437 = vmatpush.bf16.msra.mxu0 %v427_v33  ;;  %450 = vmatpush.bf16.msra.mxu1 %v430_v34 }
  0xd1   : > { %v252_v19 = vpop.permute.xlu0 %251 }
  0xd2   : > { %v254_v42 = vsel %vm253_vm9, %v250_v35, %v252_v19  ;;  %v255_v43 = vsel %vm253_vm9, %v252_v19, %v250_v35 }
  0xd3   : > { %v263_v48 = vmul.f32 %v259_v26, %v255_v43  ;;  %v264_v49 = vmul.f32 %v260_v28, %v254_v42 }
  0xd4   : > { %438 = vmatpush.bf16.msra.mxu0 %v410_v44  ;;  %451 = vmatpush.bf16.msra.mxu1 %v411_v45 }
  0xd5   : > { %v402_v51 = vsel %vm399_vm7, %v263_v48, %v378_v46  ;;  %v403_v53 = vsel %vm399_vm7, %v264_v49, %v379_v47 }
  0xd6   : > { %v408_v54 = vpack.c.bf16 %v402_v51, %v400_v50  ;;  %v409_v27 = vpack.c.bf16 %v403_v53, %v401_v52 }
  0xd8   : > { %439 = vmatpush.bf16.msra.mxu0 %v408_v54  ;;  %452 = vmatpush.bf16.msra.mxu1 %v409_v27 }
  0xdb   : > { %531 = vmatmul.msk.bf16.vlgmr.msra.gmra.mxu0 %vm421_vm10, %v414_v55  ;;  %532 = vmatmul.msk.bf16.vlgmr.msra.gmra.mxu1 %vm421_vm10, %v414_v55 }
 0x158   : > { %v441_v57 = vpop.f32.mrf.mxu0  ;;  %v454_v58 = vpop.f32.mrf.mxu1 }
 0x159   : > { %v442_v59 = vadd.f32 %v441_v57, %v419_v56  ;;  %v455_v60 = vadd.f32 %v454_v58, %v419_v56 }
 0x15b   : > { %458 = vst [vmem:[%s197_s28] sm:$0xff] %v442_v59 }
 0x15c   : > { %459 = vst [vmem:[%s197_s28 + $0x8] sm:$0xff] %v455_v60 }
 0x160   : > { %v443_v61 = vpop.f32.mrf.mxu0  ;;  %v456_v62 = vpop.f32.mrf.mxu1 }
 0x161 PF: > { %s14_s15 = sadd.s32 1, %s562_s15  }
 0x162   : > { %p11_p4 = scmp.ge.s32.totalorder %s14_s15, 4  }
 0x164   :  { %13 = sbr.rel (!%p11_p4) target bundleno = 1 (0x1), region = 73 }

</bundles_post_ra>
